<compile_context>
chip_gen: v5e
topology: v5e:2x2
jax: 0.10.0
libtpu: 0.0.40
codegen_flags: <defaults>
</compile_context>

<pallas_src>
import jax
import jax.numpy as jnp
import numpy as np
from jax import lax
from jax.experimental import pallas as pl
from jax.experimental.pallas import tpu as pltpu

# ---- module config (small, consistent with Attention(dim, heads, dim_head)) ----
B = 2          # batch
N = 8          # sequence length
DIM = 32       # model dim
HEADS = 4
DIM_HEAD = 8
INNER = HEADS * DIM_HEAD      # 32
SCALE = DIM_HEAD ** (-0.5)
OUT_PAD = 128                 # lane-dense output width (>= DIM, multiple of 128)

_CONTRACT_LAST = (((1,), (1,)), ((), ()))   # dot_general: contract last dims, no batch


def attention_kernel(x_ref, wqkv_ref, wout_ref, bout_ref, o_ref):
    # x_ref:    (B*N, DIM)
    # wqkv_ref: (DIM, 3*INNER)
    # wout_ref: (INNER, OUT_PAD)   columns >= DIM are zero padding
    # bout_ref: (1, OUT_PAD)
    # o_ref:    (B*N, OUT_PAD)
    x = x_ref[...]
    w_out = wout_ref[...]
    bias = bout_ref[...]                                     # (1, OUT_PAD)

    # QKV projection (nn.Linear(dim, 3*inner, bias=False)).
    qkv = jnp.dot(x, wqkv_ref[...], preferred_element_type=jnp.float32)  # (B*N, 3*INNER)
    q = qkv[:, :INNER]
    k = qkv[:, INNER:2 * INNER]
    v = qkv[:, 2 * INNER:]

    # All (batch, head) score tiles; contract last (feature) dim of q and k
    # directly -- no kh.T transpose.  Head h owns feature slice [h*dh, (h+1)*dh),
    # matching rearrange 'b n (h d) -> b h n d'.
    score_blocks = []
    for b in range(B):
        rows = slice(b * N, (b + 1) * N)
        for h in range(HEADS):
            cols = slice(h * DIM_HEAD, (h + 1) * DIM_HEAD)
            s = lax.dot_general(q[rows, cols], k[rows, cols], _CONTRACT_LAST,
                                preferred_element_type=jnp.float32)      # (N, N)
            score_blocks.append(s * SCALE)
    dots = jnp.concatenate(score_blocks, axis=0)             # (B*HEADS*N, N)

    # One stacked, numerically-stable softmax over all batches/heads at once.
    dots = dots - jnp.max(dots, axis=-1, keepdims=True)
    e = jnp.exp(dots)
    attn = e * pl.reciprocal(jnp.sum(e, axis=-1, keepdims=True), approx=True)

    # Per batch: accumulate each head's projected contribution.  The head concat
    # 'b h n d -> b n (h d)' is folded into the output projection:
    #   y_b = sum_h (attn_bh @ v_bh) @ w_out[h*dh:(h+1)*dh, :] + bias
    for b in range(B):
        rows = slice(b * N, (b + 1) * N)
        acc = jnp.zeros((N, OUT_PAD), dtype=jnp.float32)
        for h in range(HEADS):
            cols = slice(h * DIM_HEAD, (h + 1) * DIM_HEAD)
            idx = b * HEADS + h
            a = attn[idx * N:(idx + 1) * N, :]                           # (N, N)
            ov = jnp.dot(a, v[rows, cols],
                         preferred_element_type=jnp.float32)             # (N, dh)
            acc = acc + jnp.dot(ov, w_out[cols, :],
                                preferred_element_type=jnp.float32)      # (N, OUT_PAD)
        # Dropout(0.0) is identity.  Unmasked, full-lane store (128-wide rows).
        o_ref[pl.ds(b * N, N), :] = (acc + bias).astype(o_ref.dtype)


def attention(x, w_qkv, w_out, b_out):
    """x: (B, N, DIM); w_qkv: (DIM, 3*INNER); w_out: (INNER, DIM); b_out: (DIM,)."""
    x2 = x.reshape(B * N, DIM)                                # contiguous reshape (free)
    # Zero-pad the output projection to a lane-dense 128-wide slab.
    w_out_p = jnp.pad(w_out, ((0, 0), (0, OUT_PAD - DIM)))
    b_out_p = jnp.pad(b_out, (0, OUT_PAD - DIM)).reshape(1, OUT_PAD)

    # Single grid step: everything lives in VMEM for the whole kernel.
    # (On v7x with larger batches, grid=(B,) + ("parallel",) would shard across
    #  the 2 TensorCores; at this footprint single-step single-TC wins.)
    y = pl.pallas_call(
        attention_kernel,
        out_shape=jax.ShapeDtypeStruct((B * N, OUT_PAD), x.dtype),
        grid=(1,),
        in_specs=[
            pl.BlockSpec((B * N, DIM), lambda i: (0, 0)),
            pl.BlockSpec((DIM, 3 * INNER), lambda i: (0, 0)),
            pl.BlockSpec((INNER, OUT_PAD), lambda i: (0, 0)),
            pl.BlockSpec((1, OUT_PAD), lambda i: (0, 0)),
        ],
        out_specs=pl.BlockSpec((B * N, OUT_PAD), lambda i: (0, 0)),
        compiler_params=pltpu.CompilerParams(
            dimension_semantics=("arbitrary",)),
    )(x2, w_qkv, w_out_p, b_out_p)
    return y[:, :DIM].reshape(B, N, DIM)


def attention_reference(x, w_qkv, w_out, b_out):
    qkv = x @ w_qkv
    q, k, v = jnp.split(qkv, 3, axis=-1)

    def split_heads(t):  # 'b n (h d) -> b h n d'
        return t.reshape(B, N, HEADS, DIM_HEAD).transpose(0, 2, 1, 3)

    q, k, v = map(split_heads, (q, k, v))
    dots = jnp.einsum('bhnd,bhmd->bhnm', q, k) * SCALE
    attn = jax.nn.softmax(dots, axis=-1)
    out = jnp.einsum('bhnm,bhmd->bhnd', attn, v)
    out = out.transpose(0, 2, 1, 3).reshape(B, N, INNER)   # 'b h n d -> b n (h d)'
    return out @ w_out + b_out


if __name__ == "__main__":
    key = jax.random.PRNGKey(0)
    kx, kq, ko, kb = jax.random.split(key, 4)

    x = jax.random.normal(kx, (B, N, DIM), dtype=jnp.float32)
    # Deterministic synthetic parameters (shapes from Attention.__init__),
    # stored as (in, out) so the kernel computes x @ W (== PyTorch x @ W.T).
    w_qkv = jax.random.normal(kq, (DIM, 3 * INNER), dtype=jnp.float32) * 0.05
    w_out = jax.random.normal(ko, (INNER, DIM), dtype=jnp.float32) * 0.05
    b_out = jax.random.normal(kb, (DIM,), dtype=jnp.float32) * 0.05

    y = attention(x, w_qkv, w_out, b_out)
    jax.block_until_ready(y)

    y_ref = attention_reference(x, w_qkv, w_out, b_out)
    # Tolerance loosened (1e-5 -> 1e-3) to accommodate the EUP approximate
    # reciprocal in the softmax denominator; still far below signal magnitude.
    np.testing.assert_allclose(np.asarray(y), np.asarray(y_ref), rtol=1e-3, atol=1e-3)

    print("KERNEL_OK")
</pallas_src>

<mosaic_0001>
module attributes {stable_mosaic.version = 11 : i64} {
  func.func @attention_kernel(%arg0: i32, %arg1: memref<16x32xf32, #tpu.memory_space<vmem>>, %arg2: memref<32x96xf32, #tpu.memory_space<vmem>>, %arg3: memref<32x128xf32, #tpu.memory_space<vmem>>, %arg4: memref<1x128xf32, #tpu.memory_space<vmem>>, %arg5: memref<16x128xf32, #tpu.memory_space<vmem>>) attributes {dimension_semantics = [#tpu.dimension_semantics<arbitrary>], iteration_bounds = array<i64: 1>, scalar_prefetch = 0 : i64, scratch_operands = 0 : i64, tpu.core_type = #tpu.core_type<tc>, window_params = [{pipeline_mode = #tpu.pipeline_mode<synchronous>, transform_indices = @transform_0, window_bounds = array<i64: 16, 32>}, {pipeline_mode = #tpu.pipeline_mode<synchronous>, transform_indices = @transform_1, window_bounds = array<i64: 32, 96>}, {pipeline_mode = #tpu.pipeline_mode<synchronous>, transform_indices = @transform_2, window_bounds = array<i64: 32, 128>}, {pipeline_mode = #tpu.pipeline_mode<synchronous>, transform_indices = @transform_3, window_bounds = array<i64: 1, 128>}, {pipeline_mode = #tpu.pipeline_mode<synchronous>, transform_indices = @transform_4, window_bounds = array<i64: 16, 128>}]} {
    %c0 = arith.constant 0 : index
    %c0_0 = arith.constant 0 : index
    %0 = vector.load %arg1[%c0, %c0_0] : memref<16x32xf32, #tpu.memory_space<vmem>>, vector<16x32xf32>
    %c0_1 = arith.constant 0 : index
    %c0_2 = arith.constant 0 : index
    %1 = vector.load %arg3[%c0_1, %c0_2] : memref<32x128xf32, #tpu.memory_space<vmem>>, vector<32x128xf32>
    %c0_3 = arith.constant 0 : index
    %c0_4 = arith.constant 0 : index
    %2 = vector.load %arg4[%c0_3, %c0_4] : memref<1x128xf32, #tpu.memory_space<vmem>>, vector<1x128xf32>
    %c0_5 = arith.constant 0 : index
    %c0_6 = arith.constant 0 : index
    %3 = vector.load %arg2[%c0_5, %c0_6] : memref<32x96xf32, #tpu.memory_space<vmem>>, vector<32x96xf32>
    %cst = arith.constant dense<0.000000e+00> : vector<16x96xf32>
    %4 = tpu.matmul %0, %3, %cst {dimension_numbers = #tpu.dot_dimension_numbers<[1], [0], [0], [1], [0, 0, 1, 1], [], []>} : vector<16x32xf32>, vector<32x96xf32>, vector<16x96xf32> -> vector<16x96xf32>
    %5 = vector.extract_strided_slice %4 {offsets = [0, 0], sizes = [16, 32], strides = [1, 1]} : vector<16x96xf32> to vector<16x32xf32>
    %6 = vector.extract_strided_slice %4 {offsets = [0, 32], sizes = [16, 32], strides = [1, 1]} : vector<16x96xf32> to vector<16x32xf32>
    %7 = vector.extract_strided_slice %4 {offsets = [0, 64], sizes = [16, 32], strides = [1, 1]} : vector<16x96xf32> to vector<16x32xf32>
    %8 = vector.extract_strided_slice %5 {offsets = [0, 0], sizes = [8, 8], strides = [1, 1]} : vector<16x32xf32> to vector<8x8xf32>
    %9 = vector.extract_strided_slice %6 {offsets = [0, 0], sizes = [8, 8], strides = [1, 1]} : vector<16x32xf32> to vector<8x8xf32>
    %cst_7 = arith.constant dense<0.000000e+00> : vector<8x8xf32>
    %10 = tpu.matmul %8, %9, %cst_7 {dimension_numbers = #tpu.dot_dimension_numbers<[1], [1], [0], [0], [0, 0, 1, 0], [], []>} : vector<8x8xf32>, vector<8x8xf32>, vector<8x8xf32> -> vector<8x8xf32>
    %cst_8 = arith.constant 0.353553385 : f32
    %11 = vector.broadcast %cst_8 : f32 to vector<8x8xf32>
    %12 = arith.mulf %10, %11 : vector<8x8xf32>
    %13 = vector.extract_strided_slice %5 {offsets = [0, 8], sizes = [8, 8], strides = [1, 1]} : vector<16x32xf32> to vector<8x8xf32>
    %14 = vector.extract_strided_slice %6 {offsets = [0, 8], sizes = [8, 8], strides = [1, 1]} : vector<16x32xf32> to vector<8x8xf32>
    %cst_9 = arith.constant dense<0.000000e+00> : vector<8x8xf32>
    %15 = tpu.matmul %13, %14, %cst_9 {dimension_numbers = #tpu.dot_dimension_numbers<[1], [1], [0], [0], [0, 0, 1, 0], [], []>} : vector<8x8xf32>, vector<8x8xf32>, vector<8x8xf32> -> vector<8x8xf32>
    %cst_10 = arith.constant 0.353553385 : f32
    %16 = vector.broadcast %cst_10 : f32 to vector<8x8xf32>
    %17 = arith.mulf %15, %16 : vector<8x8xf32>
    %18 = vector.extract_strided_slice %5 {offsets = [0, 16], sizes = [8, 8], strides = [1, 1]} : vector<16x32xf32> to vector<8x8xf32>
    %19 = vector.extract_strided_slice %6 {offsets = [0, 16], sizes = [8, 8], strides = [1, 1]} : vector<16x32xf32> to vector<8x8xf32>
    %cst_11 = arith.constant dense<0.000000e+00> : vector<8x8xf32>
    %20 = tpu.matmul %18, %19, %cst_11 {dimension_numbers = #tpu.dot_dimension_numbers<[1], [1], [0], [0], [0, 0, 1, 0], [], []>} : vector<8x8xf32>, vector<8x8xf32>, vector<8x8xf32> -> vector<8x8xf32>
    %cst_12 = arith.constant 0.353553385 : f32
    %21 = vector.broadcast %cst_12 : f32 to vector<8x8xf32>
    %22 = arith.mulf %20, %21 : vector<8x8xf32>
    %23 = vector.extract_strided_slice %5 {offsets = [0, 24], sizes = [8, 8], strides = [1, 1]} : vector<16x32xf32> to vector<8x8xf32>
    %24 = vector.extract_strided_slice %6 {offsets = [0, 24], sizes = [8, 8], strides = [1, 1]} : vector<16x32xf32> to vector<8x8xf32>
    %cst_13 = arith.constant dense<0.000000e+00> : vector<8x8xf32>
    %25 = tpu.matmul %23, %24, %cst_13 {dimension_numbers = #tpu.dot_dimension_numbers<[1], [1], [0], [0], [0, 0, 1, 0], [], []>} : vector<8x8xf32>, vector<8x8xf32>, vector<8x8xf32> -> vector<8x8xf32>
    %cst_14 = arith.constant 0.353553385 : f32
    %26 = vector.broadcast %cst_14 : f32 to vector<8x8xf32>
    %27 = arith.mulf %25, %26 : vector<8x8xf32>
    %28 = vector.extract_strided_slice %5 {offsets = [8, 0], sizes = [8, 8], strides = [1, 1]} : vector<16x32xf32> to vector<8x8xf32>
    %29 = vector.extract_strided_slice %6 {offsets = [8, 0], sizes = [8, 8], strides = [1, 1]} : vector<16x32xf32> to vector<8x8xf32>
    %cst_15 = arith.constant dense<0.000000e+00> : vector<8x8xf32>
    %30 = tpu.matmul %28, %29, %cst_15 {dimension_numbers = #tpu.dot_dimension_numbers<[1], [1], [0], [0], [0, 0, 1, 0], [], []>} : vector<8x8xf32>, vector<8x8xf32>, vector<8x8xf32> -> vector<8x8xf32>
    %cst_16 = arith.constant 0.353553385 : f32
    %31 = vector.broadcast %cst_16 : f32 to vector<8x8xf32>
    %32 = arith.mulf %30, %31 : vector<8x8xf32>
    %33 = vector.extract_strided_slice %5 {offsets = [8, 8], sizes = [8, 8], strides = [1, 1]} : vector<16x32xf32> to vector<8x8xf32>
    %34 = vector.extract_strided_slice %6 {offsets = [8, 8], sizes = [8, 8], strides = [1, 1]} : vector<16x32xf32> to vector<8x8xf32>
    %cst_17 = arith.constant dense<0.000000e+00> : vector<8x8xf32>
    %35 = tpu.matmul %33, %34, %cst_17 {dimension_numbers = #tpu.dot_dimension_numbers<[1], [1], [0], [0], [0, 0, 1, 0], [], []>} : vector<8x8xf32>, vector<8x8xf32>, vector<8x8xf32> -> vector<8x8xf32>
    %cst_18 = arith.constant 0.353553385 : f32
    %36 = vector.broadcast %cst_18 : f32 to vector<8x8xf32>
    %37 = arith.mulf %35, %36 : vector<8x8xf32>
    %38 = vector.extract_strided_slice %5 {offsets = [8, 16], sizes = [8, 8], strides = [1, 1]} : vector<16x32xf32> to vector<8x8xf32>
    %39 = vector.extract_strided_slice %6 {offsets = [8, 16], sizes = [8, 8], strides = [1, 1]} : vector<16x32xf32> to vector<8x8xf32>
    %cst_19 = arith.constant dense<0.000000e+00> : vector<8x8xf32>
    %40 = tpu.matmul %38, %39, %cst_19 {dimension_numbers = #tpu.dot_dimension_numbers<[1], [1], [0], [0], [0, 0, 1, 0], [], []>} : vector<8x8xf32>, vector<8x8xf32>, vector<8x8xf32> -> vector<8x8xf32>
    %cst_20 = arith.constant 0.353553385 : f32
    %41 = vector.broadcast %cst_20 : f32 to vector<8x8xf32>
    %42 = arith.mulf %40, %41 : vector<8x8xf32>
    %43 = vector.extract_strided_slice %5 {offsets = [8, 24], sizes = [8, 8], strides = [1, 1]} : vector<16x32xf32> to vector<8x8xf32>
    %44 = vector.extract_strided_slice %6 {offsets = [8, 24], sizes = [8, 8], strides = [1, 1]} : vector<16x32xf32> to vector<8x8xf32>
    %cst_21 = arith.constant dense<0.000000e+00> : vector<8x8xf32>
    %45 = tpu.matmul %43, %44, %cst_21 {dimension_numbers = #tpu.dot_dimension_numbers<[1], [1], [0], [0], [0, 0, 1, 0], [], []>} : vector<8x8xf32>, vector<8x8xf32>, vector<8x8xf32> -> vector<8x8xf32>
    %cst_22 = arith.constant 0.353553385 : f32
    %46 = vector.broadcast %cst_22 : f32 to vector<8x8xf32>
    %47 = arith.mulf %45, %46 : vector<8x8xf32>
    %48 = tpu.concatenate %12, %17, %22, %27, %32, %37, %42, %47 in 0 : vector<8x8xf32>, vector<8x8xf32>, vector<8x8xf32>, vector<8x8xf32>, vector<8x8xf32>, vector<8x8xf32>, vector<8x8xf32>, vector<8x8xf32> -> vector<64x8xf32>
    %cst_23 = arith.constant dense<0xFF800000> : vector<64xf32>
    %49 = vector.multi_reduction <maximumf>, %48, %cst_23 [1] : vector<64x8xf32> to vector<64xf32>
    %50 = vector.shape_cast %49 : vector<64xf32> to vector<64x1xf32>
    %51 = vector.broadcast %50 : vector<64x1xf32> to vector<64x8xf32>
    %52 = arith.subf %48, %51 : vector<64x8xf32>
    %53 = math.exp %52 : vector<64x8xf32>
    %cst_24 = arith.constant dense<0.000000e+00> : vector<64xf32>
    %54 = vector.multi_reduction <add>, %53, %cst_24 [1] : vector<64x8xf32> to vector<64xf32>
    %55 = vector.shape_cast %54 : vector<64xf32> to vector<64x1xf32>
    %56 = tpu.reciprocal %55 {approx = true} : vector<64x1xf32> -> vector<64x1xf32>
    %57 = vector.broadcast %56 : vector<64x1xf32> to vector<64x8xf32>
    %58 = arith.mulf %53, %57 : vector<64x8xf32>
    %cst_25 = arith.constant 0.000000e+00 : f32
    %59 = vector.broadcast %cst_25 : f32 to vector<8x128xf32>
    %60 = vector.extract_strided_slice %58 {offsets = [0, 0], sizes = [8, 8], strides = [1, 1]} : vector<64x8xf32> to vector<8x8xf32>
    %61 = vector.extract_strided_slice %7 {offsets = [0, 0], sizes = [8, 8], strides = [1, 1]} : vector<16x32xf32> to vector<8x8xf32>
    %cst_26 = arith.constant dense<0.000000e+00> : vector<8x8xf32>
    %62 = tpu.matmul %60, %61, %cst_26 {dimension_numbers = #tpu.dot_dimension_numbers<[1], [0], [0], [1], [0, 0, 1, 1], [], []>} : vector<8x8xf32>, vector<8x8xf32>, vector<8x8xf32> -> vector<8x8xf32>
    %63 = vector.extract_strided_slice %1 {offsets = [0, 0], sizes = [8, 128], strides = [1, 1]} : vector<32x128xf32> to vector<8x128xf32>
    %cst_27 = arith.constant dense<0.000000e+00> : vector<8x128xf32>
    %64 = tpu.matmul %62, %63, %cst_27 {dimension_numbers = #tpu.dot_dimension_numbers<[1], [0], [0], [1], [0, 0, 1, 1], [], []>} : vector<8x8xf32>, vector<8x128xf32>, vector<8x128xf32> -> vector<8x128xf32>
    %65 = arith.addf %59, %64 : vector<8x128xf32>
    %66 = vector.extract_strided_slice %58 {offsets = [8, 0], sizes = [8, 8], strides = [1, 1]} : vector<64x8xf32> to vector<8x8xf32>
    %67 = vector.extract_strided_slice %7 {offsets = [0, 8], sizes = [8, 8], strides = [1, 1]} : vector<16x32xf32> to vector<8x8xf32>
    %cst_28 = arith.constant dense<0.000000e+00> : vector<8x8xf32>
    %68 = tpu.matmul %66, %67, %cst_28 {dimension_numbers = #tpu.dot_dimension_numbers<[1], [0], [0], [1], [0, 0, 1, 1], [], []>} : vector<8x8xf32>, vector<8x8xf32>, vector<8x8xf32> -> vector<8x8xf32>
    %69 = vector.extract_strided_slice %1 {offsets = [8, 0], sizes = [8, 128], strides = [1, 1]} : vector<32x128xf32> to vector<8x128xf32>
    %cst_29 = arith.constant dense<0.000000e+00> : vector<8x128xf32>
    %70 = tpu.matmul %68, %69, %cst_29 {dimension_numbers = #tpu.dot_dimension_numbers<[1], [0], [0], [1], [0, 0, 1, 1], [], []>} : vector<8x8xf32>, vector<8x128xf32>, vector<8x128xf32> -> vector<8x128xf32>
    %71 = arith.addf %65, %70 : vector<8x128xf32>
    %72 = vector.extract_strided_slice %58 {offsets = [16, 0], sizes = [8, 8], strides = [1, 1]} : vector<64x8xf32> to vector<8x8xf32>
    %73 = vector.extract_strided_slice %7 {offsets = [0, 16], sizes = [8, 8], strides = [1, 1]} : vector<16x32xf32> to vector<8x8xf32>
    %cst_30 = arith.constant dense<0.000000e+00> : vector<8x8xf32>
    %74 = tpu.matmul %72, %73, %cst_30 {dimension_numbers = #tpu.dot_dimension_numbers<[1], [0], [0], [1], [0, 0, 1, 1], [], []>} : vector<8x8xf32>, vector<8x8xf32>, vector<8x8xf32> -> vector<8x8xf32>
    %75 = vector.extract_strided_slice %1 {offsets = [16, 0], sizes = [8, 128], strides = [1, 1]} : vector<32x128xf32> to vector<8x128xf32>
    %cst_31 = arith.constant dense<0.000000e+00> : vector<8x128xf32>
    %76 = tpu.matmul %74, %75, %cst_31 {dimension_numbers = #tpu.dot_dimension_numbers<[1], [0], [0], [1], [0, 0, 1, 1], [], []>} : vector<8x8xf32>, vector<8x128xf32>, vector<8x128xf32> -> vector<8x128xf32>
    %77 = arith.addf %71, %76 : vector<8x128xf32>
    %78 = vector.extract_strided_slice %58 {offsets = [24, 0], sizes = [8, 8], strides = [1, 1]} : vector<64x8xf32> to vector<8x8xf32>
    %79 = vector.extract_strided_slice %7 {offsets = [0, 24], sizes = [8, 8], strides = [1, 1]} : vector<16x32xf32> to vector<8x8xf32>
    %cst_32 = arith.constant dense<0.000000e+00> : vector<8x8xf32>
    %80 = tpu.matmul %78, %79, %cst_32 {dimension_numbers = #tpu.dot_dimension_numbers<[1], [0], [0], [1], [0, 0, 1, 1], [], []>} : vector<8x8xf32>, vector<8x8xf32>, vector<8x8xf32> -> vector<8x8xf32>
    %81 = vector.extract_strided_slice %1 {offsets = [24, 0], sizes = [8, 128], strides = [1, 1]} : vector<32x128xf32> to vector<8x128xf32>
    %cst_33 = arith.constant dense<0.000000e+00> : vector<8x128xf32>
    %82 = tpu.matmul %80, %81, %cst_33 {dimension_numbers = #tpu.dot_dimension_numbers<[1], [0], [0], [1], [0, 0, 1, 1], [], []>} : vector<8x8xf32>, vector<8x128xf32>, vector<8x128xf32> -> vector<8x128xf32>
    %83 = arith.addf %77, %82 : vector<8x128xf32>
    %84 = vector.broadcast %2 : vector<1x128xf32> to vector<8x128xf32>
    %85 = arith.addf %83, %84 : vector<8x128xf32>
    %c0_34 = arith.constant 0 : index
    %c0_35 = arith.constant 0 : index
    %86 = vector.load %arg5[%c0_34, %c0_35] : memref<16x128xf32, #tpu.memory_space<vmem>>, vector<8x128xf32>
    tpu.vector_store %arg5[%c0_34, %c0_35], %85 {strides = array<i32>} : memref<16x128xf32, #tpu.memory_space<vmem>>, vector<8x128xf32>,
    %cst_36 = arith.constant 0.000000e+00 : f32
    %87 = vector.broadcast %cst_36 : f32 to vector<8x128xf32>
    %88 = vector.extract_strided_slice %58 {offsets = [32, 0], sizes = [8, 8], strides = [1, 1]} : vector<64x8xf32> to vector<8x8xf32>
    %89 = vector.extract_strided_slice %7 {offsets = [8, 0], sizes = [8, 8], strides = [1, 1]} : vector<16x32xf32> to vector<8x8xf32>
    %cst_37 = arith.constant dense<0.000000e+00> : vector<8x8xf32>
    %90 = tpu.matmul %88, %89, %cst_37 {dimension_numbers = #tpu.dot_dimension_numbers<[1], [0], [0], [1], [0, 0, 1, 1], [], []>} : vector<8x8xf32>, vector<8x8xf32>, vector<8x8xf32> -> vector<8x8xf32>
    %91 = vector.extract_strided_slice %1 {offsets = [0, 0], sizes = [8, 128], strides = [1, 1]} : vector<32x128xf32> to vector<8x128xf32>
    %cst_38 = arith.constant dense<0.000000e+00> : vector<8x128xf32>
    %92 = tpu.matmul %90, %91, %cst_38 {dimension_numbers = #tpu.dot_dimension_numbers<[1], [0], [0], [1], [0, 0, 1, 1], [], []>} : vector<8x8xf32>, vector<8x128xf32>, vector<8x128xf32> -> vector<8x128xf32>
    %93 = arith.addf %87, %92 : vector<8x128xf32>
    %94 = vector.extract_strided_slice %58 {offsets = [40, 0], sizes = [8, 8], strides = [1, 1]} : vector<64x8xf32> to vector<8x8xf32>
    %95 = vector.extract_strided_slice %7 {offsets = [8, 8], sizes = [8, 8], strides = [1, 1]} : vector<16x32xf32> to vector<8x8xf32>
    %cst_39 = arith.constant dense<0.000000e+00> : vector<8x8xf32>
    %96 = tpu.matmul %94, %95, %cst_39 {dimension_numbers = #tpu.dot_dimension_numbers<[1], [0], [0], [1], [0, 0, 1, 1], [], []>} : vector<8x8xf32>, vector<8x8xf32>, vector<8x8xf32> -> vector<8x8xf32>
    %97 = vector.extract_strided_slice %1 {offsets = [8, 0], sizes = [8, 128], strides = [1, 1]} : vector<32x128xf32> to vector<8x128xf32>
    %cst_40 = arith.constant dense<0.000000e+00> : vector<8x128xf32>
    %98 = tpu.matmul %96, %97, %cst_40 {dimension_numbers = #tpu.dot_dimension_numbers<[1], [0], [0], [1], [0, 0, 1, 1], [], []>} : vector<8x8xf32>, vector<8x128xf32>, vector<8x128xf32> -> vector<8x128xf32>
    %99 = arith.addf %93, %98 : vector<8x128xf32>
    %100 = vector.extract_strided_slice %58 {offsets = [48, 0], sizes = [8, 8], strides = [1, 1]} : vector<64x8xf32> to vector<8x8xf32>
    %101 = vector.extract_strided_slice %7 {offsets = [8, 16], sizes = [8, 8], strides = [1, 1]} : vector<16x32xf32> to vector<8x8xf32>
    %cst_41 = arith.constant dense<0.000000e+00> : vector<8x8xf32>
    %102 = tpu.matmul %100, %101, %cst_41 {dimension_numbers = #tpu.dot_dimension_numbers<[1], [0], [0], [1], [0, 0, 1, 1], [], []>} : vector<8x8xf32>, vector<8x8xf32>, vector<8x8xf32> -> vector<8x8xf32>
    %103 = vector.extract_strided_slice %1 {offsets = [16, 0], sizes = [8, 128], strides = [1, 1]} : vector<32x128xf32> to vector<8x128xf32>
    %cst_42 = arith.constant dense<0.000000e+00> : vector<8x128xf32>
    %104 = tpu.matmul %102, %103, %cst_42 {dimension_numbers = #tpu.dot_dimension_numbers<[1], [0], [0], [1], [0, 0, 1, 1], [], []>} : vector<8x8xf32>, vector<8x128xf32>, vector<8x128xf32> -> vector<8x128xf32>
    %105 = arith.addf %99, %104 : vector<8x128xf32>
    %106 = vector.extract_strided_slice %58 {offsets = [56, 0], sizes = [8, 8], strides = [1, 1]} : vector<64x8xf32> to vector<8x8xf32>
    %107 = vector.extract_strided_slice %7 {offsets = [8, 24], sizes = [8, 8], strides = [1, 1]} : vector<16x32xf32> to vector<8x8xf32>
    %cst_43 = arith.constant dense<0.000000e+00> : vector<8x8xf32>
    %108 = tpu.matmul %106, %107, %cst_43 {dimension_numbers = #tpu.dot_dimension_numbers<[1], [0], [0], [1], [0, 0, 1, 1], [], []>} : vector<8x8xf32>, vector<8x8xf32>, vector<8x8xf32> -> vector<8x8xf32>
    %109 = vector.extract_strided_slice %1 {offsets = [24, 0], sizes = [8, 128], strides = [1, 1]} : vector<32x128xf32> to vector<8x128xf32>
    %cst_44 = arith.constant dense<0.000000e+00> : vector<8x128xf32>
    %110 = tpu.matmul %108, %109, %cst_44 {dimension_numbers = #tpu.dot_dimension_numbers<[1], [0], [0], [1], [0, 0, 1, 1], [], []>} : vector<8x8xf32>, vector<8x128xf32>, vector<8x128xf32> -> vector<8x128xf32>
    %111 = arith.addf %105, %110 : vector<8x128xf32>
    %112 = vector.broadcast %2 : vector<1x128xf32> to vector<8x128xf32>
    %113 = arith.addf %111, %112 : vector<8x128xf32>
    %c8 = arith.constant 8 : index
    %c0_45 = arith.constant 0 : index
    %114 = vector.load %arg5[%c8, %c0_45] : memref<16x128xf32, #tpu.memory_space<vmem>>, vector<8x128xf32>
    tpu.vector_store %arg5[%c8, %c0_45], %113 {strides = array<i32>} : memref<16x128xf32, #tpu.memory_space<vmem>>, vector<8x128xf32>,
    return
  }
  func.func @transform_0(%arg0: i32) -> (i32, i32) {
    %c0_i32 = arith.constant 0 : i32
    %c0_i32_0 = arith.constant 0 : i32
    %c0_i32_1 = arith.constant 0 : i32
    return %c0_i32, %c0_i32_0 : i32, i32
  }
  func.func @transform_1(%arg0: i32) -> (i32, i32) {
    %c0_i32 = arith.constant 0 : i32
    %c0_i32_0 = arith.constant 0 : i32
    %c0_i32_1 = arith.constant 0 : i32
    return %c0_i32, %c0_i32_0 : i32, i32
  }
  func.func @transform_2(%arg0: i32) -> (i32, i32) {
    %c0_i32 = arith.constant 0 : i32
    %c0_i32_0 = arith.constant 0 : i32
    %c0_i32_1 = arith.constant 0 : i32
    return %c0_i32, %c0_i32_0 : i32, i32
  }
  func.func @transform_3(%arg0: i32) -> (i32, i32) {
    %c0_i32 = arith.constant 0 : i32
    %c0_i32_0 = arith.constant 0 : i32
    %c0_i32_1 = arith.constant 0 : i32
    return %c0_i32, %c0_i32_0 : i32, i32
  }
  func.func @transform_4(%arg0: i32) -> (i32, i32) {
    %c0_i32 = arith.constant 0 : i32
    %c0_i32_0 = arith.constant 0 : i32
    %c0_i32_1 = arith.constant 0 : i32
    return %c0_i32, %c0_i32_0 : i32, i32
  }
}

</mosaic_0001>

<bundles_post_ra>
// kernel: tpu_custom_call.1
= control target key start
LH: loop header
LB: loop body
LE: loop exit
PB: predicated region body
PF: predicated region fallthrough
CT: control target
= control target key end

     0   :  { %9 = vsyncpa [#allocation3], 0  ;;  %s1199_s0 = inlined_call_operand.hbm [shape: f32[16,32], index: 0, kind: input, shape index: {}]   ;;  %s1200_s1 = inlined_call_operand.hbm [shape: f32[32,96], index: 1, kind: input, shape index: {}]   ;;  %s1201_s2 = inlined_call_operand.hbm [shape: f32[32,128], index: 2, kind: input, shape index: {}]   ;;  %s1202_s3 = inlined_call_operand.vmem [shape: f32[1,128], index: 3, kind: input, shape index: {}]   ;;  %s1203_s4 = inlined_call_operand.hbm [shape: f32[16,128], index: 4, kind: output, shape index: {}]  }
   0x1   :  { %10 = vsyncpa [#allocation6], 0 }
   0x2   :  { %11 = vsyncpa [#allocation4], 0  ;;  %s29_s17 = sshll.u32 %s1200_s1, 4  ;;  %s1034_s18 = smov [#allocation5]   ;;  %s30_s17 = int_to_ptr.hbm [resolvable:$true] %s29_s17 }
   0x3   :  { %s31_s19 = sshll.u32 %s1034_s18, 4  ;;  %s16_s22 = sshll.u32 %s1199_s0, 4  ;;  %s32_s19 = int_to_ptr.vmem [resolvable:$true] %s31_s19  ;;  %s17_s22 = int_to_ptr.hbm [resolvable:$true] %s16_s22 }
   0x4   :  { %s1035_s23 = smov 128   ;;  %s1036_s24 = smov 8  }
   0x5   :  { %37 = dma.hbm_to_vmem [thread:$0]  %s30_s17, 512, %s32_s19, [#allocation6], %s1035_s23, %s1035_s23, %s1036_s24  }
   0x6   :  { %s1037_s25 = smov [#allocation2]   ;;  %s42_s1 = sshll.u32 %s1201_s2, 4  ;;  %s43_s1 = int_to_ptr.hbm [resolvable:$true] %s42_s1 }
   0x7   :  { %s18_s26 = sshll.u32 %s1037_s25, 4  ;;  %s1038_s0 = smov [#allocation7]   ;;  %s19_s26 = int_to_ptr.vmem [resolvable:$true] %s18_s26 }
   0x8   :  { %24 = dma.hbm_to_vmem [thread:$0]  %s17_s22, 256, %s19_s26, [#allocation3], %s1035_s23, %s1035_s23, %s1036_s24  }
   0x9   :  { %s44_s29 = sshll.u32 %s1038_s0, 4  ;;  %s45_s29 = int_to_ptr.vmem [resolvable:$true] %s44_s29 }
   0xa   :  { %50 = dma.hbm_to_vmem [thread:$0]  %s43_s1, 512, %s45_s29, [#allocation6], %s1035_s23, %s1035_s23, %s1036_s24  }
   0xb   :  { %1028 = dma.done.wait [#allocation3], 256  }
   0xc   :  { %1029 = vsyncadd [#allocation3], 4294967040 }
   0xd   :  { %1030 = dma.done.wait [#allocation6], 1024  }
   0xe   :  { %1031 = vsyncadd [#allocation6], 4294966272  ;;  %v75_v0 = vld [vmem:[#allocation5 + $0x18] sm:$0xff]  ;;  %v74_v1 = vld [vmem:[#allocation5 + $0x10] sm:$0xff]  ;;  %vm76_vm0 = vcmask 261120   ;;  %s1039_s2 = smov 120  }
   0xf   :  { %95 = vmatpush.msra.mxu0 %v75_v0  ;;  %v73_v2 = vld [vmem:[#allocation5 + $0x8] sm:$0xff]  ;;  %v72_v3 = vld [vmem:[#allocation5] sm:$0xff]  ;;  %v65_v4 = vld [vmem:[#allocation2] sm:$0xff]  ;;  %s1040_s30 = smov 112   ;;  %s1041_s5 = smov 96   ;;  %vm109_vm1 = vcmask 64512  }
  0x10   :  { %v66_v5 = vld [vmem:[#allocation2 + $0x8] sm:$0xff]  ;;  %s1042_s6 = smov 88   ;;  %s1043_s7 = smov 80   ;;  %v69_v58 = vld [vmem:[#allocation7 + $0x10] sm:$0xff] }
  0x11   :  { %96 = vmatpush.msra.mxu0 %v74_v1  ;;  %s1044_s8 = smov 64   ;;  %s1045_s9 = smov 72  }
  0x12   :  { %s1046_s10 = smov 104   ;;  %s1047_s11 = smov 56  }
  0x13   :  { %97 = vmatpush.msra.mxu0 %v73_v2  ;;  %s1048_s12 = smov 48   ;;  %s1049_s13 = smov 40  }
  0x14   :  { %s1050_s16 = smov [#allocation8]   ;;  %s834_s20 = sshll.u32 %s1203_s4, 4  ;;  %s835_s20 = int_to_ptr.hbm [resolvable:$true] %s834_s20 }
  0x15   :  { %98 = vmatpush.msra.mxu0 %v72_v3  ;;  %s832_s17 = sshll.u32 %s1050_s16, 4  ;;  %s833_s17 = int_to_ptr.vmem [resolvable:$true] %s832_s17 }
  0x16   :  { %848 = vmatmul.msk.f32.vlgmr.msra.gmra.mxu0 %vm76_vm0, %v65_v4  ;;  %v1157_v4 = vld [vmem:[#allocation7] sm:$0xff] }
  0x1e   :  { %849 = vmatmul.msk.f32.gmra.mxu0 %vm76_vm0, %v66_v5 }
  0x93   :  { %v1094_v6 = vpop.f32.mrf.mxu0 }
  0x94   :  { %135 = vrot.lane.b32.xlu2 %v1094_v6, %s1039_s2  ;;  %164 = vrot.lane.b32.xlu1 %v1094_v6, %s1040_s30 }
  0x95   :  { %107 = vrot.lane.b32.xlu0 %v1094_v6, %s1041_s5 }
  0x9b   :  { %v1104_v7 = vpop.f32.mrf.mxu0 }
  0x9c   :  { %137 = vrot.lane.b32.xlu1 %v1094_v6, %s1042_s6  ;;  %252 = vrot.lane.b32.xlu2 %v1104_v7, %s1042_s6 }
  0x9d   :  { %166 = vrot.lane.b32.xlu0 %v1094_v6, %s1043_s7 }
  0xa5   :  { %250 = vrot.lane.b32.xlu0 %v1104_v7, %s1039_s2 }
  0xee   :  { %v136_v12 = vpop.permute.xlu2 %135 }
  0xf6   :  { %v253_v16 = vpop.permute.xlu2 %252 }
 0x106   :  { %v165_v8 = vpop.permute.xlu1 %164 }
 0x107   :  { %v108_v9 = vpop.permute.xlu0 %107 }
 0x108   :  { %850 = vmatpush.xpose.msk.msra.mxu1 %vm109_vm1, %v108_v9 }
 0x10b   :  { %851 = vmatmul.msk.f32.vlgmr.msra.gmra.mxu1 %vm109_vm1, %v1094_v6 }
 0x10e   :  { %v138_v10 = vpop.permute.xlu1 %137 }
 0x10f   :  { %v167_v11 = vpop.permute.xlu0 %166  ;;  %852 = vmatpush.xpose.msk.msra.mxu2 %vm109_vm1, %v138_v10 }
 0x110   :  { %854 = vmatpush.xpose.msk.msra.mxu3 %vm109_vm1, %v167_v11 }
 0x112   :  { %853 = vmatmul.msk.f32.vlgmr.msra.gmra.mxu2 %vm109_vm1, %v136_v12 }
 0x113   :  { %855 = vmatmul.msk.f32.vlgmr.msra.gmra.mxu3 %vm109_vm1, %v165_v8 }
 0x114   :  { %860 = vmatpush.xpose.msk.msrb.mxu3 %vm109_vm1, %v253_v16 }
 0x117   :  { %v251_v18 = vpop.permute.xlu0 %250 }
 0x11b   :  { %861 = vmatmul.msk.f32.vlgmr.msrb.gmra.mxu3 %vm109_vm1, %v251_v18 }
 0x188   :  { %v131_v13 = vpop.f32.mrf.mxu1 }
 0x189   :  { %v134_v14 = vmul.f32 0.35355338, %v131_v13 }
 0x18b   :  { %v337_v15 = vsel %vm109_vm1, %v134_v14, -inf }
 0x18c   :  { %338 = vmax.xlane.f32.xlu1 %v337_v15 }
 0x195   :  { %v160_v21 = vpop.f32.mrf.mxu2 }
 0x196   :  { %v189_v17 = vpop.f32.mrf.mxu3  ;;  %v163_v22 = vmul.f32 0.35355338, %v160_v21  ;;  %v68_v21 = vld [vmem:[#allocation7 + $0x8] sm:$0xff] }
 0x197   :  { %v192_v19 = vmul.f32 0.35355338, %v189_v17 }
 0x198   :  { %v340_v23 = vsel %vm109_vm1, %v163_v22, -inf }
 0x199   :  { %v343_v20 = vsel %vm109_vm1, %v192_v19, -inf }
 0x19a   :  { %344 = vmax.xlane.f32.xlu2 %v343_v20 }
 0x19e   :  { %v275_v37 = vpop.f32.mrf.mxu3 }
 0x19f   :  { %v278_v38 = vmul.f32 0.35355338, %v275_v37 }
 0x1a1   :  { %v352_v40 = vsel %vm109_vm1, %v278_v38, -inf }
 0x1a5   :  { %425 = vrot.lane.b32.xlu1 %v1094_v6, %s1044_s8 }
 0x1ad   :  { %195 = vrot.lane.b32.xlu1 %v1094_v6, %s1045_s9 }
 0x1b5   :  { %308 = vrot.lane.b32.xlu1 %v1104_v7, %s1046_s10 }
 0x1df   :  { %341 = vmax.xlane.f32.xlu1 %v340_v23 }
 0x1f8   :  { %451 = vrot.lane.b32.xlu1 %v1094_v6, %s1047_s11 }
 0x1ff   :  { %v339_v24 = vpop.xlane.xlu1 %338 }
 0x200   :  { %v361_v25 = vsub.f32 %v134_v14, %v339_v24 }
 0x202   :  { %v369_v26 = vmul.f32 1.442695, %v361_v25 }
 0x204   :  { %900 = vpow2.f32 %v369_v26 }
 0x20a   :  { %v901_v27 = vpop.eup %900 }
 0x20b   :  { %v385_v28 = vsel %vm109_vm1, %v901_v27, 0.0 }
 0x20c   :  { %386 = vadd.xlane.f32.xlu0 %v385_v28 }
 0x20d   :  { %v345_v29 = vpop.xlane.xlu2 %344 }
 0x20e   :  { %v363_v30 = vsub.f32 %v192_v19, %v345_v29 }
 0x210   :  { %v373_v31 = vmul.f32 1.442695, %v363_v30 }
 0x212   :  { %902 = vpow2.f32 %v373_v31 }
 0x217   :  { %v426_v32 = vpop.permute.xlu1 %425 }
 0x218   :  { %v903_v33 = vpop.eup %902  ;;  %446 = vmatpush.msra.mxu3 %v426_v32 }
 0x219   :  { %v391_v34 = vsel %vm109_vm1, %v903_v33, 0.0 }
 0x21a   :  { %392 = vadd.xlane.f32.xlu2 %v391_v34 }
 0x21f   :  { %v196_v35 = vpop.permute.xlu1 %195 }
 0x220   :  { %856 = vmatpush.xpose.msk.msrb.mxu1 %vm109_vm1, %v196_v35  ;;  %223 = vrot.lane.b32.xlu0 %v1104_v7, %s1041_s5 }
 0x227   :  { %v309_v36 = vpop.permute.xlu1 %308 }
 0x228   :  { %193 = vrot.lane.b32.xlu0 %v1094_v6, %s1046_s10 }
 0x230   :  { %281 = vrot.lane.b32.xlu0 %v1104_v7, %s1043_s7 }
 0x232   :  { %523 = vrot.lane.b32.xlu2 %v1094_v6, %s1048_s12 }
 0x23a   :  { %310 = vrot.lane.b32.xlu2 %v1104_v7, %s1045_s9 }
 0x242   :  { %279 = vrot.lane.b32.xlu2 %v1104_v7, %s1040_s30 }
 0x252   :  { %v342_v39 = vpop.xlane.xlu1 %341 }
 0x253   :  { %v362_v41 = vsub.f32 %v163_v22, %v342_v39 }
 0x255   :  { %v371_v42 = vmul.f32 1.442695, %v362_v41 }
 0x257   :  { %904 = vpow2.f32 %v371_v42 }
 0x25a   :  { %353 = vmax.xlane.f32.xlu0 %v352_v40 }
 0x25d   :  { %v905_v43 = vpop.eup %904 }
 0x25e   :  { %v388_v45 = vsel %vm109_vm1, %v905_v43, 0.0 }
 0x26a   :  { %v452_v44 = vpop.permute.xlu1 %451 }
 0x26b   :  { %472 = vmatpush.msrb.mxu0 %v452_v44  ;;  %389 = vadd.xlane.f32.xlu2 %v388_v45 }
 0x26d   :  { %567 = vmatpush.msra.mxu0 %v69_v58 }
 0x27f   :  { %v387_v46 = vpop.xlane.xlu0 %386 }
 0x280   :  { %906 = vrcp.f32 %v387_v46 }
 0x283   :  { %654 = vrot.lane.b32.xlu2 %v1104_v7, %s1047_s11 }
 0x286   :  { %v907_v47 = vpop.eup %906 }
 0x287   :  { %v417_v48 = vmul.f32 %v907_v47, %v901_v27 }
 0x289   :  { %866 = vmatmul.msk.f32.vlgmr.msra.gmra.mxu3 %vm109_vm1, %v417_v48 }
 0x28d   :  { %v393_v49 = vpop.xlane.xlu2 %392 }
 0x28e   :  { %908 = vrcp.f32 %v393_v49 }
 0x292   :  { %v224_v50 = vpop.permute.xlu0 %223 }
 0x293   :  { %858 = vmatpush.xpose.msk.msrb.mxu2 %vm109_vm1, %v224_v50 }
 0x294   :  { %v909_v51 = vpop.eup %908 }
 0x295   :  { %v419_v52 = vmul.f32 %v909_v51, %v903_v33  ;;  %v524_v53 = vpop.permute.xlu2 %523 }
 0x296   :  { %859 = vmatmul.msk.f32.vlgmr.msrb.gmra.mxu2 %vm109_vm1, %v1104_v7  ;;  %544 = vmatpush.msrb.mxu3 %v524_v53 }
 0x297   :  { %870 = vmatmul.msk.f32.vlgmr.msrb.gmra.mxu3 %vm109_vm1, %v419_v52 }
 0x29a   :  { %v194_v54 = vpop.permute.xlu0 %193 }
 0x29b   :  { %857 = vmatmul.msk.f32.vlgmr.msrb.gmra.mxu1 %vm109_vm1, %v194_v54 }
 0x29d   :  { %v311_v55 = vpop.permute.xlu2 %310 }
 0x29e   :  { %864 = vmatpush.xpose.msk.msra.mxu2 %vm109_vm1, %v311_v55 }
 0x2a1   :  { %865 = vmatmul.msk.f32.vlgmr.msra.gmra.mxu2 %vm109_vm1, %v309_v36 }
 0x2a2   :  { %v282_v56 = vpop.permute.xlu0 %281  ;;  %518 = vmatpush.msrb.mxu2 %v1157_v4 }
 0x2a3   :  { %862 = vmatpush.xpose.msk.msra.mxu1 %vm109_vm1, %v282_v56 }
 0x2a5   :  { %v280_v57 = vpop.permute.xlu2 %279 }
 0x2a6   :  { %863 = vmatmul.msk.f32.vlgmr.msra.gmra.mxu1 %vm109_vm1, %v280_v57 }
 0x2a7   :  { %495 = vmatpush.msrb.mxu1 %v68_v21 }
 0x2cd   :  { %v354_v59 = vpop.xlane.xlu0 %353 }
 0x2ce   :  { %v366_v60 = vsub.f32 %v278_v38, %v354_v59 }
 0x2d0   :  { %v379_v61 = vmul.f32 1.442695, %v366_v60 }
 0x2d2   :  { %910 = vpow2.f32 %v379_v61 }
 0x2d8   :  { %v911_v62 = vpop.eup %910 }
 0x2d9   :  { %v400_v63 = vsel %vm109_vm1, %v911_v62, 0.0 }
 0x2da   :  { %401 = vadd.xlane.f32.xlu0 %v400_v63 }
 0x2de   :  { %v390_v0 = vpop.xlane.xlu2 %389 }
 0x2df   :  { %912 = vrcp.f32 %v390_v0 }
 0x2e5   :  { %v913_v1 = vpop.eup %912 }
 0x2e6   :  { %v655_v2 = vpop.permute.xlu2 %654  ;;  %v418_v3 = vmul.f32 %v913_v1, %v905_v43 }
 0x2e8   :  { %867 = vmatmul.msk.f32.vlgmr.msrb.gmra.mxu0 %vm109_vm1, %v418_v3 }
 0x2e9   :  { %675 = vmatpush.msrb.mxu0 %v655_v2 }
 0x30c   :  { %v448_v5 = vpop.f32.mrf.mxu3 }
 0x30d   :  { %869 = vmatmul.msk.f32.vlgmr.msrb.gmra.mxu2 %vm109_vm1, %v448_v5 }
 0x318   :  { %v218_v8 = vpop.f32.mrf.mxu1 }
 0x319   :  { %v221_v9 = vmul.f32 0.35355338, %v218_v8  ;;  %v246_v12 = vpop.f32.mrf.mxu2 }
 0x31a   :  { %v546_v10 = vpop.f32.mrf.mxu3  ;;  %v249_v13 = vmul.f32 0.35355338, %v246_v12 }
 0x31b   :  { %871 = vmatmul.msk.f32.vlgmr.msra.gmra.mxu0 %vm109_vm1, %v546_v10  ;;  %v346_v11 = vsel %vm109_vm1, %v221_v9, -inf }
 0x31c   :  { %347 = vmax.xlane.f32.xlu0 %v346_v11  ;;  %770 = vmatpush.msra.mxu0 %v69_v58  ;;  %v349_v15 = vsel %vm109_vm1, %v249_v13, -inf }
 0x323   :  { %v304_v14 = vpop.f32.mrf.mxu1 }
 0x324   :  { %v307_v16 = vmul.f32 0.35355338, %v304_v14  ;;  %350 = vmax.xlane.f32.xlu0 %v349_v15  ;;  %v333_v17 = vpop.f32.mrf.mxu2 }
 0x325   :  { %v336_v19 = vmul.f32 0.35355338, %v333_v17 }
 0x326   :  { %v355_v18 = vsel %vm109_vm1, %v307_v16, -inf }
 0x327   :  { %356 = vmax.xlane.f32.xlu1 %v355_v18  ;;  %v358_v20 = vsel %vm109_vm1, %v336_v19, -inf }
 0x32c   :  { %359 = vmax.xlane.f32.xlu0 %v358_v20 }
 0x340   :  { %573 = vrot.lane.b32.xlu0 %v1094_v6, %s1049_s13 }
 0x348   :  { %628 = vrot.lane.b32.xlu0 %v1104_v7, %s1044_s8 }
 0x34d   :  { %v402_v22 = vpop.xlane.xlu0 %401 }
 0x34e   :  { %914 = vrcp.f32 %v402_v22 }
 0x354   :  { %v915_v23 = vpop.eup %914 }
 0x355   :  { %v422_v24 = vmul.f32 %v915_v23, %v911_v62  ;;  %v70_v62 = vld [vmem:[#allocation7 + $0x18] sm:$0xff] }
 0x356   :  { %617 = vmatpush.msra.mxu2 %v70_v62 }
 0x357   :  { %875 = vmatmul.msk.f32.vlgmr.msrb.gmra.mxu0 %vm109_vm1, %v422_v24 }
 0x358   :  { %721 = vmatpush.msrb.mxu2 %v1157_v4  ;;  %v899_v4 = vld [vmem:[%s1202_s3] ss:$0 sm:$0xff] }
 0x365   :  { %v474_v25 = vpop.f32.mrf.mxu0 }
 0x366   :  { %868 = vmatmul.msk.f32.vlgmr.msrb.gmra.mxu1 %vm109_vm1, %v474_v25 }
 0x38f   :  { %v348_v26 = vpop.xlane.xlu0 %347 }
 0x390   :  { %v364_v27 = vsub.f32 %v221_v9, %v348_v26  ;;  %v520_v8 = vpop.f32.mrf.mxu2 }
 0x392   :  { %v375_v28 = vmul.f32 1.442695, %v364_v27 }
 0x394   :  { %916 = vpow2.f32 %v375_v28 }
 0x397   :  { %v351_v29 = vpop.xlane.xlu0 %350 }
 0x398   :  { %v365_v6 = vsub.f32 %v249_v13, %v351_v29  ;;  %v569_v51 = vpop.f32.mrf.mxu0 }
 0x39a   :  { %v917_v30 = vpop.eup %916  ;;  %v377_v31 = vmul.f32 1.442695, %v365_v6  ;;  %v357_v32 = vpop.xlane.xlu1 %356 }
 0x39b   :  { %v367_v33 = vsub.f32 %v307_v16, %v357_v32  ;;  %v394_v34 = vsel %vm109_vm1, %v917_v30, 0.0 }
 0x39c   :  { %918 = vpow2.f32 %v377_v31  ;;  %395 = vadd.xlane.f32.xlu2 %v394_v34 }
 0x39d   :  { %v381_v35 = vmul.f32 1.442695, %v367_v33 }
 0x39f   :  { %920 = vpow2.f32 %v381_v35  ;;  %v360_v36 = vpop.xlane.xlu0 %359 }
 0x3a0   :  { %v368_v37 = vsub.f32 %v336_v19, %v360_v36 }
 0x3a2   :  { %v919_v38 = vpop.eup %918  ;;  %v383_v39 = vmul.f32 1.442695, %v368_v37 }
 0x3a3   :  { %v397_v40 = vsel %vm109_vm1, %v919_v38, 0.0 }
 0x3a4   :  { %922 = vpow2.f32 %v383_v39  ;;  %398 = vadd.xlane.f32.xlu0 %v397_v40 }
 0x3a5   :  { %v921_v41 = vpop.eup %920 }
 0x3a6   :  { %v403_v42 = vsel %vm109_vm1, %v921_v41, 0.0 }
 0x3a7   :  { %404 = vadd.xlane.f32.xlu1 %v403_v42 }
 0x3aa   :  { %v923_v43 = vpop.eup %922 }
 0x3ab   :  { %v406_v44 = vsel %vm109_vm1, %v923_v43, 0.0 }
 0x3ac   :  { %407 = vadd.xlane.f32.xlu2 %v406_v44 }
 0x3b2   :  { %v574_v45 = vpop.permute.xlu0 %573 }
 0x3b3   :  { %594 = vmatpush.msra.mxu1 %v574_v45 }
 0x3b5   :  { %698 = vmatpush.msrb.mxu1 %v68_v21 }
 0x3b8   :  { %726 = vrot.lane.b32.xlu0 %v1104_v7, %s1048_s12 }
 0x3ba   :  { %v629_v46 = vpop.permute.xlu0 %628 }
 0x3bb   :  { %649 = vmatpush.msra.mxu3 %v629_v46 }
 0x3c0   :  { %776 = vrot.lane.b32.xlu1 %v1104_v7, %s1049_s13 }
 0x3d4   :  { %v677_v55 = vpop.f32.mrf.mxu0 }
 0x3e3   :  { %v497_v63 = vpop.f32.mrf.mxu1 }
 0x3e4   :  { %v521_v9 = vadd.f32 %v520_v8, %v497_v63 }
 0x3e6   :  { %v572_v10 = vadd.f32 %v569_v51, %v521_v9 }
 0x40f   :  { %v396_v47 = vpop.xlane.xlu2 %395 }
 0x410   :  { %924 = vrcp.f32 %v396_v47 }
 0x416   :  { %v925_v48 = vpop.eup %924 }
 0x417   :  { %v420_v49 = vmul.f32 %v925_v48, %v917_v30  ;;  %v399_v50 = vpop.xlane.xlu0 %398 }
 0x418   :  { %926 = vrcp.f32 %v399_v50 }
 0x419   :  { %872 = vmatmul.msk.f32.vlgmr.msra.gmra.mxu1 %vm109_vm1, %v420_v49 }
 0x41a   :  { %v405_v53 = vpop.xlane.xlu1 %404 }
 0x41b   :  { %928 = vrcp.f32 %v405_v53 }
 0x41e   :  { %v927_v52 = vpop.eup %926 }
 0x41f   :  { %v421_v54 = vmul.f32 %v927_v52, %v919_v38  ;;  %v408_v56 = vpop.xlane.xlu2 %407 }
 0x420   :  { %930 = vrcp.f32 %v408_v56 }
 0x421   :  { %874 = vmatmul.msk.f32.vlgmr.msra.gmra.mxu3 %vm109_vm1, %v421_v54  ;;  %876 = vmatmul.msk.f32.vlgmr.msrb.gmra.mxu1 %vm109_vm1, %v677_v55  ;;  %v929_v7 = vpop.eup %928 }
 0x422   :  { %v423_v57 = vmul.f32 %v929_v7, %v921_v41 }
 0x426   :  { %v931_v59 = vpop.eup %930 }
 0x427   :  { %v424_v60 = vmul.f32 %v931_v59, %v923_v43 }
 0x42a   :  { %v727_v58 = vpop.permute.xlu0 %726 }
 0x42b   :  { %747 = vmatpush.msrb.mxu3 %v727_v58 }
 0x42c   :  { %878 = vmatmul.msk.f32.vlgmr.msrb.gmra.mxu3 %vm109_vm1, %v423_v57 }
 0x432   :  { %v777_v61 = vpop.permute.xlu1 %776 }
 0x433   :  { %797 = vmatpush.msra.mxu1 %v777_v61 }
 0x434   :  { %880 = vmatmul.msk.f32.vlgmr.msra.gmra.mxu1 %vm109_vm1, %v424_v60 }
 0x496   :  { %v596_v0 = vpop.f32.mrf.mxu1 }
 0x497   :  { %873 = vmatmul.msk.f32.vlgmr.msra.gmra.mxu2 %vm109_vm1, %v596_v0 }
 0x498   :  { %820 = vmatpush.msra.mxu2 %v70_v62 }
 0x49e   :  { %v700_v2 = vpop.f32.mrf.mxu1 }
 0x4a4   :  { %v651_v1 = vpop.f32.mrf.mxu3 }
 0x4a5   :  { %877 = vmatmul.msk.f32.vlgmr.msrb.gmra.mxu2 %vm109_vm1, %v651_v1 }
 0x4af   :  { %v749_v3 = vpop.f32.mrf.mxu3 }
 0x4b0   :  { %879 = vmatmul.msk.f32.vlgmr.msra.gmra.mxu0 %vm109_vm1, %v749_v3 }
 0x4b1   :  { %v799_v5 = vpop.f32.mrf.mxu1 }
 0x4b2   :  { %881 = vmatmul.msk.f32.vlgmr.msra.gmra.mxu2 %vm109_vm1, %v799_v5 }
 0x51a   :  { %v619_v11 = vpop.f32.mrf.mxu2 }
 0x51b   :  { %v622_v12 = vadd.f32 %v619_v11, %v572_v10 }
 0x51d   :  { %v626_v13 = vadd.f32 %v899_v4, %v622_v12 }
 0x51f   :  { %627 = vst [vmem:[#allocation8] sm:$0xff] %v626_v13 }
 0x528   :  { %v723_v14 = vpop.f32.mrf.mxu2 }
 0x529   :  { %v724_v16 = vadd.f32 %v723_v14, %v700_v2 }
 0x52d   :  { %v772_v15 = vpop.f32.mrf.mxu0 }
 0x52e   :  { %v775_v17 = vadd.f32 %v772_v15, %v724_v16 }
 0x535   :  { %v822_v18 = vpop.f32.mrf.mxu2 }
 0x536   :  { %v825_v19 = vadd.f32 %v822_v18, %v775_v17 }
 0x538   :  { %v826_v20 = vadd.f32 %v899_v4, %v825_v19 }
 0x53a   :  { %827 = vst [vmem:[#allocation8 + $0x8] sm:$0xff] %v826_v20 }
 0x53b   :  { %840 = dma.vmem_to_hbm [thread:$0]  %s833_s17, 256, %s835_s20, [#allocation4], %s1035_s23, %s1035_s23, %s1036_s24  }
 0x53c   :  { %1032 = dma.done.wait [#allocation4], 256  }
 0x53d   :  { %1033 = vsyncadd [#allocation4], 4294967040 }
 0x53e   :  { %845 = vsyncpa [#allocation3], 1 }
 0x53f   :  { %846 = vsyncpa [#allocation6], 1 }
 0x540   :  { %847 = vsyncpa [#allocation4], 1 }

</bundles_post_ra>
